<compile_context>
chip_gen: v5e
topology: v5e:2x2
jax: 0.10.0
libtpu: 0.0.40
codegen_flags: <defaults>
</compile_context>

<pallas_src>
import math
import numpy as np
import jax
import jax.numpy as jnp
from jax import lax
from jax.experimental import pallas as pl
from jax.experimental.pallas import tpu as pltpu


# ------------------------------- helpers ----------------------------------- #

def _gelu_exact(x):
    # Matches torch.nn.GELU() default (erf-based, non-approximate).
    return 0.5 * x * (1.0 + lax.erf(x * (1.0 / math.sqrt(2.0))))


def _round_up(x, k):
    return (x + k - 1) // k * k


def _padded_bytes(shape, itemsize=4):
    # fp32 VMEM footprint of one block: last dim pads to 128 lanes,
    # second-last to 8 sublanes.
    s = list(shape)
    s[-1] = _round_up(s[-1], 128)
    if len(s) >= 2:
        s[-2] = _round_up(s[-2], 8)
    total = itemsize
    for d in s:
        total *= d
    return total


def _vmem_limit(nbytes):
    # Generation-aware cap: ~80% of physical VMEM (v5e/v6e: 128 MiB, v7x: 64 MiB)
    # so compiler scratch and double buffers always have headroom.
    try:
        info = pltpu.get_tpu_info()
        cap = int(getattr(info, "vmem_capacity_bytes", 0)) or (64 << 20)
    except Exception:  # interpret mode / older API surface
        cap = 64 << 20
    ceiling = (cap * 4) // 5
    return int(min(max(nbytes + (4 << 20), 32 << 20), ceiling))


def _pick_graph_block(g, n, f, h, m=0, target_bytes=4 << 20):
    # Per-graph, double-buffered, padding-aware block bytes; choose GB so one
    # grid step moves ~target_bytes, then round DOWN to a divisor of G so every
    # block is full (no edge blocks, unmasked stores).
    per_graph = 2 * (_padded_bytes((1, n, f)) + _padded_bytes((1, n + 1, h)))
    if m:
        per_graph += 2 * (_padded_bytes((1, m, 80)) + _padded_bytes((1, 1, 400)))
    gb = max(1, min(g, target_bytes // max(per_graph, 1)))
    while g % gb:
        gb -= 1
    return int(gb)


def _resident_spec(shape):
    # Weight resident across the whole (1-D) grid.
    nd = len(shape)
    return pl.BlockSpec(shape, lambda i: (0,) * nd)


# ------------------------------- kernels ------------------------------------ #

def _fused_kernel(node_ref, masif_ref, gbs_ref,
                  mw1_ref, mb1_ref, mw2_ref, mb2_ref,
                  gw1_ref, gb1_ref, gw2_ref, gb2_ref,
                  fwm_ref, fwg_ref, tokb_ref,
                  nw_ref, nb_ref, o_ref):
    # Blocks per grid step (GB graphs):
    #   node:[GB,N,F]  masif:[GB,M,80]  gbs:[GB,1,400]  ->  o:[GB,N+1,H]
    gb_, n_, f_ = node_ref.shape
    m_ = masif_ref.shape[1]
    h_ = nw_ref.shape[1]

    # --- global branch ------------------------------------------------------
    masif_mean = jnp.sum(masif_ref[...], axis=1) / float(m_)                   # [GB, 80]
    mh = _gelu_exact(jnp.dot(masif_mean, mw1_ref[...],
                             preferred_element_type=jnp.float32) + mb1_ref[...])
    masif_emb = jnp.dot(mh, mw2_ref[...],
                        preferred_element_type=jnp.float32) + mb2_ref[...]     # [GB, H]

    gbs = gbs_ref[...].reshape(gb_, gbs_ref.shape[-1])                         # [GB, 400]
    gh = _gelu_exact(jnp.dot(gbs, gw1_ref[...],
                             preferred_element_type=jnp.float32) + gb1_ref[...])
    gb_emb = jnp.dot(gh, gw2_ref[...],
                     preferred_element_type=jnp.float32) + gb2_ref[...]        # [GB, H]

    # feature fusion: concat([gt, masif_emb, gb_emb]) @ Wf + bf.  The graph-token
    # term (gt @ Wf[0:H] + bf) is pre-folded into tokb in the wrapper, so this is
    # two matmuls against static slices of Wf plus a bias.
    fused = (jnp.dot(masif_emb, fwm_ref[...], preferred_element_type=jnp.float32)
             + jnp.dot(gb_emb, fwg_ref[...], preferred_element_type=jnp.float32)
             + tokb_ref[...])                                                  # [GB, H]

    # --- node linear ---------------------------------------------------------
    # (GB, N, F) -> (GB*N, F) is a layout-preserving collapse when N % 8 == 0,
    # then a plain 2-D MXU matmul.
    nodes = jnp.dot(node_ref[...].reshape(gb_ * n_, f_), nw_ref[...],
                    preferred_element_type=jnp.float32)
    nodes = nodes.reshape(gb_, n_, h_) + nb_ref[...].reshape(1, 1, h_)         # [GB, N, H]

    # --- single aligned full-block store -------------------------------------
    # 1-row sublane shift happens in registers; the HBM writeback (the dominant
    # data path of this kernel) uses unmasked full-tile stores.
    full = jnp.concatenate([fused.reshape(gb_, 1, h_), nodes], axis=1)         # [GB, N+1, H]
    o_ref[...] = full.astype(o_ref.dtype)


def _node_token_kernel(node_ref, tok_ref, nw_ref, nb_ref, o_ref):
    # Fallback path (no global features): row 0 = raw graph-token embedding.
    gb_, n_, f_ = node_ref.shape
    h_ = nw_ref.shape[1]
    nodes = jnp.dot(node_ref[...].reshape(gb_ * n_, f_), nw_ref[...],
                    preferred_element_type=jnp.float32)
    nodes = nodes.reshape(gb_, n_, h_) + nb_ref[...].reshape(1, 1, h_)
    tok = jnp.broadcast_to(tok_ref[...].reshape(1, 1, h_), (gb_, 1, h_))
    o_ref[...] = jnp.concatenate([tok, nodes], axis=1).astype(o_ref.dtype)


# ------------------------------- wrappers ----------------------------------- #

def _fused_forward(node_feat, masif, gbscore, params, h, out_dtype=jnp.float32):
    g, n, f = node_feat.shape
    m, dm = masif.shape[1], masif.shape[2]
    dg = gbscore.shape[1]
    gb = _pick_graph_block(g, n, f, h, m)

    # Keep the graph axis out of the (8,128)-tiled dims for gbscore (free
    # metadata reshape), so arbitrary GB block sizes stay legal.
    gbscore3 = gbscore.reshape(g, 1, dg)

    # Fold the graph-token contribution of feature_fusion into one bias vector
    # (removes two kernel inputs and one [1,H]x[H,H] matmul per step).
    tok_bias = params["graph_token"] @ params["fuse_w"][:h] + params["fuse_b"]  # [1, H]
    fuse_w_m = params["fuse_w"][h:2 * h]       # masif slice of the fusion weight
    fuse_w_g = params["fuse_w"][2 * h:3 * h]   # gbscore slice

    # TODO(synk): if downstream tolerates it, pass the big resident weights
    # (masif_w2 / gb_w2 / fuse slices) as bf16 (accumulate in f32) to halve
    # resident VMEM on v7x, and emit a bf16 output to halve the writeback.
    w_args = (params["masif_w1"], params["masif_b1"], params["masif_w2"], params["masif_b2"],
              params["gb_w1"], params["gb_b1"], params["gb_w2"], params["gb_b2"],
              fuse_w_m, fuse_w_g, tok_bias,
              params["node_w"], params["node_b"])
    w_specs = [_resident_spec(tuple(w.shape)) for w in w_args]

    blocks = [(gb, n, f), (gb, m, dm), (gb, 1, dg), (gb, n + 1, h)] \
        + [tuple(w.shape) for w in w_args]
    nbytes = 2 * sum(_padded_bytes(s) for s in blocks)   # double-buffered, padded

    return pl.pallas_call(
        _fused_kernel,
        out_shape=jax.ShapeDtypeStruct((g, n + 1, h), out_dtype),
        grid=(g // gb,),
        in_specs=[
            pl.BlockSpec((gb, n, f), lambda i: (i, 0, 0)),     # node_feat block
            pl.BlockSpec((gb, m, dm), lambda i: (i, 0, 0)),    # masif block (streams, not resident)
            pl.BlockSpec((gb, 1, dg), lambda i: (i, 0, 0)),    # gbscore block
        ] + w_specs,
        out_specs=pl.BlockSpec((gb, n + 1, h), lambda i: (i, 0, 0)),
        compiler_params=pltpu.CompilerParams(
            dimension_semantics=("parallel",),                 # graph blocks shard across TCs (v7x)
            vmem_limit_bytes=_vmem_limit(nbytes)),
    )(node_feat, masif, gbscore3, *w_args)


def _token_forward(node_feat, params, h, out_dtype=jnp.float32):
    g, n, f = node_feat.shape
    gb = _pick_graph_block(g, n, f, h)
    w_args = (params["graph_token"], params["node_w"], params["node_b"])
    w_specs = [_resident_spec(tuple(w.shape)) for w in w_args]
    blocks = [(gb, n, f), (gb, n + 1, h)] + [tuple(w.shape) for w in w_args]
    nbytes = 2 * sum(_padded_bytes(s) for s in blocks)
    return pl.pallas_call(
        _node_token_kernel,
        out_shape=jax.ShapeDtypeStruct((g, n + 1, h), out_dtype),
        grid=(g // gb,),
        in_specs=[pl.BlockSpec((gb, n, f), lambda i: (i, 0, 0))] + w_specs,
        out_specs=pl.BlockSpec((gb, n + 1, h), lambda i: (i, 0, 0)),
        compiler_params=pltpu.CompilerParams(
            dimension_semantics=("parallel",),
            vmem_limit_bytes=_vmem_limit(nbytes)),
    )(node_feat, *w_args)


# -------------------------- parameter construction ------------------------- #

def init_params(key, node_feat_dim=9, hidden_dim=768, n_layers=12):
    std = 0.02 / math.sqrt(n_layers)
    ks = jax.random.split(key, 8)

    def lin(k, din, dout):
        w = std * jax.random.normal(k, (din, dout), jnp.float32)   # stored [in, out]
        b = jnp.zeros((1, dout), jnp.float32)
        return w, b

    params = {}
    params["node_w"], params["node_b"] = lin(ks[0], node_feat_dim, hidden_dim)
    params["graph_token"] = 0.02 * jax.random.normal(ks[1], (1, hidden_dim), jnp.float32)
    params["masif_w1"], params["masif_b1"] = lin(ks[2], 80, hidden_dim)
    params["masif_w2"], params["masif_b2"] = lin(ks[3], hidden_dim, hidden_dim)
    params["gb_w1"], params["gb_b1"] = lin(ks[4], 400, hidden_dim)
    params["gb_w2"], params["gb_b2"] = lin(ks[5], hidden_dim, hidden_dim)
    params["fuse_w"], params["fuse_b"] = lin(ks[6], 3 * hidden_dim, hidden_dim)
    return params


# ------------------------------- forward ----------------------------------- #

def affincraft_node_feature(params, batched_data, hidden_dim, out_dtype=jnp.float32):
    node_feat = batched_data["node_feat"].astype(jnp.float32)   # [G, N, F]
    has_masif = "masif_desc_straight" in batched_data
    has_gb = "gbscore" in batched_data
    if has_masif and has_gb:
        masif = batched_data["masif_desc_straight"].astype(jnp.float32)   # [G, M, 80]
        gbscore = batched_data["gbscore"].astype(jnp.float32)             # [G, 400]
        return _fused_forward(node_feat, masif, gbscore, params, hidden_dim, out_dtype)
    # Module semantics: with no global features, the raw graph-token embedding is used.
    # TODO(synk): constructor variants use_masif xor use_gbscore (which change
    # feature_fusion's input width) are not wired up; defaults assume both features.
    return _token_forward(node_feat, params, hidden_dim, out_dtype)


# --------------------------- pure-JAX reference ----------------------------- #

def reference_forward(params, batched_data, hidden_dim):
    node_feat = batched_data["node_feat"].astype(jnp.float32)
    g = node_feat.shape[0]
    node_features = node_feat @ params["node_w"] + params["node_b"]
    graph_token = jnp.broadcast_to(params["graph_token"], (g, hidden_dim))

    def gelu(x):
        return 0.5 * x * (1.0 + lax.erf(x / jnp.sqrt(2.0)))

    feats = [graph_token]
    if "masif_desc_straight" in batched_data:
        mg = batched_data["masif_desc_straight"].astype(jnp.float32).mean(axis=1)
        feats.append(gelu(mg @ params["masif_w1"] + params["masif_b1"])
                     @ params["masif_w2"] + params["masif_b2"])
    if "gbscore" in batched_data:
        feats.append(gelu(batched_data["gbscore"].astype(jnp.float32) @ params["gb_w1"]
                          + params["gb_b1"]) @ params["gb_w2"] + params["gb_b2"])
    if len(feats) > 1:
        token = jnp.concatenate(feats, axis=1) @ params["fuse_w"] + params["fuse_b"]
    else:
        token = graph_token
    return jnp.concatenate([token[:, None, :], node_features], axis=1)


# --------------------------------- main ------------------------------------ #

if __name__ == "__main__":
    key = jax.random.PRNGKey(0)
    k_params, k_node, k_masif, k_gb = jax.random.split(key, 4)

    # small, module-consistent shapes
    G, N, NODE_FEAT_DIM, HIDDEN, N_LAYERS = 2, 8, 9, 32, 12
    M_MASIF = 6

    params = init_params(k_params, node_feat_dim=NODE_FEAT_DIM,
                         hidden_dim=HIDDEN, n_layers=N_LAYERS)

    batched_data = {
        "node_feat": jax.random.normal(k_node, (G, N, NODE_FEAT_DIM), jnp.float32),
        "masif_desc_straight": jax.random.normal(k_masif, (G, M_MASIF, 80), jnp.float32),
        "gbscore": jax.random.normal(k_gb, (G, 400), jnp.float32),
    }

    # main path: masif + gbscore global-feature fusion
    out = jax.block_until_ready(affincraft_node_feature(params, batched_data, HIDDEN))
    ref = jax.block_until_ready(reference_forward(params, batched_data, HIDDEN))
    assert out.shape == (G, N + 1, HIDDEN), out.shape
    assert np.allclose(np.asarray(out), np.asarray(ref), atol=1e-5, rtol=1e-5)

    # fallback path: no global features -> raw graph token in row 0
    nodes_only = {"node_feat": batched_data["node_feat"]}
    out2 = jax.block_until_ready(affincraft_node_feature(params, nodes_only, HIDDEN))
    ref2 = jax.block_until_ready(reference_forward(params, nodes_only, HIDDEN))
    assert out2.shape == (G, N + 1, HIDDEN), out2.shape
    assert np.allclose(np.asarray(out2), np.asarray(ref2), atol=1e-5, rtol=1e-5)

    print("KERNEL_OK")
</pallas_src>

<mosaic_0001>
module attributes {stable_mosaic.version = 11 : i64} {
  func.func @_fused_kernel(%arg0: i32, %arg1: memref<2x8x9xf32, #tpu.memory_space<vmem>>, %arg2: memref<2x6x80xf32, #tpu.memory_space<vmem>>, %arg3: memref<2x1x400xf32, #tpu.memory_space<vmem>>, %arg4: memref<80x32xf32, #tpu.memory_space<vmem>>, %arg5: memref<1x32xf32, #tpu.memory_space<vmem>>, %arg6: memref<32x32xf32, #tpu.memory_space<vmem>>, %arg7: memref<1x32xf32, #tpu.memory_space<vmem>>, %arg8: memref<400x32xf32, #tpu.memory_space<vmem>>, %arg9: memref<1x32xf32, #tpu.memory_space<vmem>>, %arg10: memref<32x32xf32, #tpu.memory_space<vmem>>, %arg11: memref<1x32xf32, #tpu.memory_space<vmem>>, %arg12: memref<32x32xf32, #tpu.memory_space<vmem>>, %arg13: memref<32x32xf32, #tpu.memory_space<vmem>>, %arg14: memref<1x32xf32, #tpu.memory_space<vmem>>, %arg15: memref<9x32xf32, #tpu.memory_space<vmem>>, %arg16: memref<1x32xf32, #tpu.memory_space<vmem>>, %arg17: memref<2x9x32xf32, #tpu.memory_space<vmem>>) attributes {dimension_semantics = [#tpu.dimension_semantics<parallel>], iteration_bounds = array<i64: 1>, scalar_prefetch = 0 : i64, scratch_operands = 0 : i64, tpu.core_type = #tpu.core_type<tc>, window_params = [{transform_indices = @transform_0, window_bounds = array<i64: 2, 8, 9>}, {transform_indices = @transform_1, window_bounds = array<i64: 2, 6, 80>}, {transform_indices = @transform_2, window_bounds = array<i64: 2, 1, 400>}, {pipeline_mode = #tpu.pipeline_mode<synchronous>, transform_indices = @transform_3, window_bounds = array<i64: 80, 32>}, {pipeline_mode = #tpu.pipeline_mode<synchronous>, transform_indices = @transform_4, window_bounds = array<i64: 1, 32>}, {pipeline_mode = #tpu.pipeline_mode<synchronous>, transform_indices = @transform_5, window_bounds = array<i64: 32, 32>}, {pipeline_mode = #tpu.pipeline_mode<synchronous>, transform_indices = @transform_6, window_bounds = array<i64: 1, 32>}, {pipeline_mode = #tpu.pipeline_mode<synchronous>, transform_indices = @transform_7, window_bounds = array<i64: 400, 32>}, {pipeline_mode = #tpu.pipeline_mode<synchronous>, transform_indices = @transform_8, window_bounds = array<i64: 1, 32>}, {pipeline_mode = #tpu.pipeline_mode<synchronous>, transform_indices = @transform_9, window_bounds = array<i64: 32, 32>}, {pipeline_mode = #tpu.pipeline_mode<synchronous>, transform_indices = @transform_10, window_bounds = array<i64: 1, 32>}, {pipeline_mode = #tpu.pipeline_mode<synchronous>, transform_indices = @transform_11, window_bounds = array<i64: 32, 32>}, {pipeline_mode = #tpu.pipeline_mode<synchronous>, transform_indices = @transform_12, window_bounds = array<i64: 32, 32>}, {pipeline_mode = #tpu.pipeline_mode<synchronous>, transform_indices = @transform_13, window_bounds = array<i64: 1, 32>}, {pipeline_mode = #tpu.pipeline_mode<synchronous>, transform_indices = @transform_14, window_bounds = array<i64: 9, 32>}, {pipeline_mode = #tpu.pipeline_mode<synchronous>, transform_indices = @transform_15, window_bounds = array<i64: 1, 32>}, {transform_indices = @transform_16, window_bounds = array<i64: 2, 9, 32>}]} {
    %c0 = arith.constant 0 : index
    %c0_0 = arith.constant 0 : index
    %c0_1 = arith.constant 0 : index
    %0 = vector.load %arg2[%c0, %c0_0, %c0_1] : memref<2x6x80xf32, #tpu.memory_space<vmem>>, vector<2x6x80xf32>
    %cst = arith.constant dense<0.000000e+00> : vector<2x80xf32>
    %1 = vector.multi_reduction <add>, %0, %cst [1] : vector<2x6x80xf32> to vector<2x80xf32>
    %cst_2 = arith.constant 6.000000e+00 : f32
    %2 = vector.broadcast %cst_2 : f32 to vector<2x80xf32>
    %3 = arith.divf %1, %2 : vector<2x80xf32>
    %c0_3 = arith.constant 0 : index
    %c0_4 = arith.constant 0 : index
    %4 = vector.load %arg4[%c0_3, %c0_4] : memref<80x32xf32, #tpu.memory_space<vmem>>, vector<80x32xf32>
    %cst_5 = arith.constant dense<0.000000e+00> : vector<2x32xf32>
    %5 = tpu.matmul %3, %4, %cst_5 {dimension_numbers = #tpu.dot_dimension_numbers<[1], [0], [0], [1], [0, 0, 1, 1], [], []>} : vector<2x80xf32>, vector<80x32xf32>, vector<2x32xf32> -> vector<2x32xf32>
    %c0_6 = arith.constant 0 : index
    %c0_7 = arith.constant 0 : index
    %6 = vector.load %arg5[%c0_6, %c0_7] : memref<1x32xf32, #tpu.memory_space<vmem>>, vector<1x32xf32>
    %7 = vector.broadcast %6 : vector<1x32xf32> to vector<2x32xf32>
    %8 = arith.addf %5, %7 : vector<2x32xf32>
    %cst_8 = arith.constant 5.000000e-01 : f32
    %9 = vector.broadcast %cst_8 : f32 to vector<2x32xf32>
    %10 = arith.mulf %9, %8 : vector<2x32xf32>
    %cst_9 = arith.constant 0.707106769 : f32
    %11 = vector.broadcast %cst_9 : f32 to vector<2x32xf32>
    %12 = arith.mulf %8, %11 : vector<2x32xf32>
    %13 = math.erf %12 : vector<2x32xf32>
    %cst_10 = arith.constant 1.000000e+00 : f32
    %14 = vector.broadcast %cst_10 : f32 to vector<2x32xf32>
    %15 = arith.addf %14, %13 : vector<2x32xf32>
    %16 = arith.mulf %10, %15 : vector<2x32xf32>
    %c0_11 = arith.constant 0 : index
    %c0_12 = arith.constant 0 : index
    %17 = vector.load %arg6[%c0_11, %c0_12] : memref<32x32xf32, #tpu.memory_space<vmem>>, vector<32x32xf32>
    %cst_13 = arith.constant dense<0.000000e+00> : vector<2x32xf32>
    %18 = tpu.matmul %16, %17, %cst_13 {dimension_numbers = #tpu.dot_dimension_numbers<[1], [0], [0], [1], [0, 0, 1, 1], [], []>} : vector<2x32xf32>, vector<32x32xf32>, vector<2x32xf32> -> vector<2x32xf32>
    %c0_14 = arith.constant 0 : index
    %c0_15 = arith.constant 0 : index
    %19 = vector.load %arg7[%c0_14, %c0_15] : memref<1x32xf32, #tpu.memory_space<vmem>>, vector<1x32xf32>
    %20 = vector.broadcast %19 : vector<1x32xf32> to vector<2x32xf32>
    %21 = arith.addf %18, %20 : vector<2x32xf32>
    %c0_16 = arith.constant 0 : index
    %c0_17 = arith.constant 0 : index
    %c0_18 = arith.constant 0 : index
    %22 = vector.load %arg3[%c0_16, %c0_17, %c0_18] : memref<2x1x400xf32, #tpu.memory_space<vmem>>, vector<2x1x400xf32>
    %23 = vector.shape_cast %22 : vector<2x1x400xf32> to vector<2x400xf32>
    %c0_19 = arith.constant 0 : index
    %c0_20 = arith.constant 0 : index
    %24 = vector.load %arg8[%c0_19, %c0_20] : memref<400x32xf32, #tpu.memory_space<vmem>>, vector<400x32xf32>
    %cst_21 = arith.constant dense<0.000000e+00> : vector<2x32xf32>
    %25 = tpu.matmul %23, %24, %cst_21 {dimension_numbers = #tpu.dot_dimension_numbers<[1], [0], [0], [1], [0, 0, 1, 1], [], []>} : vector<2x400xf32>, vector<400x32xf32>, vector<2x32xf32> -> vector<2x32xf32>
    %c0_22 = arith.constant 0 : index
    %c0_23 = arith.constant 0 : index
    %26 = vector.load %arg9[%c0_22, %c0_23] : memref<1x32xf32, #tpu.memory_space<vmem>>, vector<1x32xf32>
    %27 = vector.broadcast %26 : vector<1x32xf32> to vector<2x32xf32>
    %28 = arith.addf %25, %27 : vector<2x32xf32>
    %cst_24 = arith.constant 5.000000e-01 : f32
    %29 = vector.broadcast %cst_24 : f32 to vector<2x32xf32>
    %30 = arith.mulf %29, %28 : vector<2x32xf32>
    %cst_25 = arith.constant 0.707106769 : f32
    %31 = vector.broadcast %cst_25 : f32 to vector<2x32xf32>
    %32 = arith.mulf %28, %31 : vector<2x32xf32>
    %33 = math.erf %32 : vector<2x32xf32>
    %cst_26 = arith.constant 1.000000e+00 : f32
    %34 = vector.broadcast %cst_26 : f32 to vector<2x32xf32>
    %35 = arith.addf %34, %33 : vector<2x32xf32>
    %36 = arith.mulf %30, %35 : vector<2x32xf32>
    %c0_27 = arith.constant 0 : index
    %c0_28 = arith.constant 0 : index
    %37 = vector.load %arg10[%c0_27, %c0_28] : memref<32x32xf32, #tpu.memory_space<vmem>>, vector<32x32xf32>
    %cst_29 = arith.constant dense<0.000000e+00> : vector<2x32xf32>
    %38 = tpu.matmul %36, %37, %cst_29 {dimension_numbers = #tpu.dot_dimension_numbers<[1], [0], [0], [1], [0, 0, 1, 1], [], []>} : vector<2x32xf32>, vector<32x32xf32>, vector<2x32xf32> -> vector<2x32xf32>
    %c0_30 = arith.constant 0 : index
    %c0_31 = arith.constant 0 : index
    %39 = vector.load %arg11[%c0_30, %c0_31] : memref<1x32xf32, #tpu.memory_space<vmem>>, vector<1x32xf32>
    %40 = vector.broadcast %39 : vector<1x32xf32> to vector<2x32xf32>
    %41 = arith.addf %38, %40 : vector<2x32xf32>
    %c0_32 = arith.constant 0 : index
    %c0_33 = arith.constant 0 : index
    %42 = vector.load %arg12[%c0_32, %c0_33] : memref<32x32xf32, #tpu.memory_space<vmem>>, vector<32x32xf32>
    %cst_34 = arith.constant dense<0.000000e+00> : vector<2x32xf32>
    %43 = tpu.matmul %21, %42, %cst_34 {dimension_numbers = #tpu.dot_dimension_numbers<[1], [0], [0], [1], [0, 0, 1, 1], [], []>} : vector<2x32xf32>, vector<32x32xf32>, vector<2x32xf32> -> vector<2x32xf32>
    %c0_35 = arith.constant 0 : index
    %c0_36 = arith.constant 0 : index
    %44 = vector.load %arg13[%c0_35, %c0_36] : memref<32x32xf32, #tpu.memory_space<vmem>>, vector<32x32xf32>
    %cst_37 = arith.constant dense<0.000000e+00> : vector<2x32xf32>
    %45 = tpu.matmul %41, %44, %cst_37 {dimension_numbers = #tpu.dot_dimension_numbers<[1], [0], [0], [1], [0, 0, 1, 1], [], []>} : vector<2x32xf32>, vector<32x32xf32>, vector<2x32xf32> -> vector<2x32xf32>
    %46 = arith.addf %43, %45 : vector<2x32xf32>
    %c0_38 = arith.constant 0 : index
    %c0_39 = arith.constant 0 : index
    %47 = vector.load %arg14[%c0_38, %c0_39] : memref<1x32xf32, #tpu.memory_space<vmem>>, vector<1x32xf32>
    %48 = vector.broadcast %47 : vector<1x32xf32> to vector<2x32xf32>
    %49 = arith.addf %46, %48 : vector<2x32xf32>
    %c0_40 = arith.constant 0 : index
    %c0_41 = arith.constant 0 : index
    %c0_42 = arith.constant 0 : index
    %50 = vector.load %arg1[%c0_40, %c0_41, %c0_42] : memref<2x8x9xf32, #tpu.memory_space<vmem>>, vector<2x8x9xf32>
    %51 = vector.shape_cast %50 : vector<2x8x9xf32> to vector<16x9xf32>
    %c0_43 = arith.constant 0 : index
    %c0_44 = arith.constant 0 : index
    %52 = vector.load %arg15[%c0_43, %c0_44] : memref<9x32xf32, #tpu.memory_space<vmem>>, vector<9x32xf32>
    %cst_45 = arith.constant dense<0.000000e+00> : vector<16x32xf32>
    %53 = tpu.matmul %51, %52, %cst_45 {dimension_numbers = #tpu.dot_dimension_numbers<[1], [0], [0], [1], [0, 0, 1, 1], [], []>} : vector<16x9xf32>, vector<9x32xf32>, vector<16x32xf32> -> vector<16x32xf32>
    %54 = vector.shape_cast %53 : vector<16x32xf32> to vector<2x8x32xf32>
    %c0_46 = arith.constant 0 : index
    %c0_47 = arith.constant 0 : index
    %55 = vector.load %arg16[%c0_46, %c0_47] : memref<1x32xf32, #tpu.memory_space<vmem>>, vector<1x32xf32>
    %56 = vector.shape_cast %55 : vector<1x32xf32> to vector<1x1x32xf32>
    %57 = vector.broadcast %56 : vector<1x1x32xf32> to vector<2x8x32xf32>
    %58 = arith.addf %54, %57 : vector<2x8x32xf32>
    %59 = vector.shape_cast %49 : vector<2x32xf32> to vector<2x1x32xf32>
    %60 = tpu.concatenate %59, %58 in 1 : vector<2x1x32xf32>, vector<2x8x32xf32> -> vector<2x9x32xf32>
    %c0_48 = arith.constant 0 : index
    %c0_49 = arith.constant 0 : index
    %c0_50 = arith.constant 0 : index
    %61 = vector.load %arg17[%c0_48, %c0_49, %c0_50] : memref<2x9x32xf32, #tpu.memory_space<vmem>>, vector<2x9x32xf32>
    tpu.vector_store %arg17[%c0_48, %c0_49, %c0_50], %60 {strides = array<i32>} : memref<2x9x32xf32, #tpu.memory_space<vmem>>, vector<2x9x32xf32>,
    return
  }
  func.func @transform_0(%arg0: i32) -> (i32, i32, i32) {
    %c0_i32 = arith.constant 0 : i32
    %c0_i32_0 = arith.constant 0 : i32
    %c0_i32_1 = arith.constant 0 : i32
    return %arg0, %c0_i32, %c0_i32_0 : i32, i32, i32
  }
  func.func @transform_1(%arg0: i32) -> (i32, i32, i32) {
    %c0_i32 = arith.constant 0 : i32
    %c0_i32_0 = arith.constant 0 : i32
    %c0_i32_1 = arith.constant 0 : i32
    return %arg0, %c0_i32, %c0_i32_0 : i32, i32, i32
  }
  func.func @transform_2(%arg0: i32) -> (i32, i32, i32) {
    %c0_i32 = arith.constant 0 : i32
    %c0_i32_0 = arith.constant 0 : i32
    %c0_i32_1 = arith.constant 0 : i32
    return %arg0, %c0_i32, %c0_i32_0 : i32, i32, i32
  }
  func.func @transform_3(%arg0: i32) -> (i32, i32) {
    %c0_i32 = arith.constant 0 : i32
    %c0_i32_0 = arith.constant 0 : i32
    %c0_i32_1 = arith.constant 0 : i32
    return %c0_i32, %c0_i32_0 : i32, i32
  }
  func.func @transform_4(%arg0: i32) -> (i32, i32) {
    %c0_i32 = arith.constant 0 : i32
    %c0_i32_0 = arith.constant 0 : i32
    %c0_i32_1 = arith.constant 0 : i32
    return %c0_i32, %c0_i32_0 : i32, i32
  }
  func.func @transform_5(%arg0: i32) -> (i32, i32) {
    %c0_i32 = arith.constant 0 : i32
    %c0_i32_0 = arith.constant 0 : i32
    %c0_i32_1 = arith.constant 0 : i32
    return %c0_i32, %c0_i32_0 : i32, i32
  }
  func.func @transform_6(%arg0: i32) -> (i32, i32) {
    %c0_i32 = arith.constant 0 : i32
    %c0_i32_0 = arith.constant 0 : i32
    %c0_i32_1 = arith.constant 0 : i32
    return %c0_i32, %c0_i32_0 : i32, i32
  }
  func.func @transform_7(%arg0: i32) -> (i32, i32) {
    %c0_i32 = arith.constant 0 : i32
    %c0_i32_0 = arith.constant 0 : i32
    %c0_i32_1 = arith.constant 0 : i32
    return %c0_i32, %c0_i32_0 : i32, i32
  }
  func.func @transform_8(%arg0: i32) -> (i32, i32) {
    %c0_i32 = arith.constant 0 : i32
    %c0_i32_0 = arith.constant 0 : i32
    %c0_i32_1 = arith.constant 0 : i32
    return %c0_i32, %c0_i32_0 : i32, i32
  }
  func.func @transform_9(%arg0: i32) -> (i32, i32) {
    %c0_i32 = arith.constant 0 : i32
    %c0_i32_0 = arith.constant 0 : i32
    %c0_i32_1 = arith.constant 0 : i32
    return %c0_i32, %c0_i32_0 : i32, i32
  }
  func.func @transform_10(%arg0: i32) -> (i32, i32) {
    %c0_i32 = arith.constant 0 : i32
    %c0_i32_0 = arith.constant 0 : i32
    %c0_i32_1 = arith.constant 0 : i32
    return %c0_i32, %c0_i32_0 : i32, i32
  }
  func.func @transform_11(%arg0: i32) -> (i32, i32) {
    %c0_i32 = arith.constant 0 : i32
    %c0_i32_0 = arith.constant 0 : i32
    %c0_i32_1 = arith.constant 0 : i32
    return %c0_i32, %c0_i32_0 : i32, i32
  }
  func.func @transform_12(%arg0: i32) -> (i32, i32) {
    %c0_i32 = arith.constant 0 : i32
    %c0_i32_0 = arith.constant 0 : i32
    %c0_i32_1 = arith.constant 0 : i32
    return %c0_i32, %c0_i32_0 : i32, i32
  }
  func.func @transform_13(%arg0: i32) -> (i32, i32) {
    %c0_i32 = arith.constant 0 : i32
    %c0_i32_0 = arith.constant 0 : i32
    %c0_i32_1 = arith.constant 0 : i32
    return %c0_i32, %c0_i32_0 : i32, i32
  }
  func.func @transform_14(%arg0: i32) -> (i32, i32) {
    %c0_i32 = arith.constant 0 : i32
    %c0_i32_0 = arith.constant 0 : i32
    %c0_i32_1 = arith.constant 0 : i32
    return %c0_i32, %c0_i32_0 : i32, i32
  }
  func.func @transform_15(%arg0: i32) -> (i32, i32) {
    %c0_i32 = arith.constant 0 : i32
    %c0_i32_0 = arith.constant 0 : i32
    %c0_i32_1 = arith.constant 0 : i32
    return %c0_i32, %c0_i32_0 : i32, i32
  }
  func.func @transform_16(%arg0: i32) -> (i32, i32, i32) {
    %c0_i32 = arith.constant 0 : i32
    %c0_i32_0 = arith.constant 0 : i32
    %c0_i32_1 = arith.constant 0 : i32
    return %arg0, %c0_i32, %c0_i32_0 : i32, i32, i32
  }
}

</mosaic_0001>

<bundles_post_ra>
// kernel: tpu_custom_call.1
= control target key start
LH: loop header
LB: loop body
LE: loop exit
PB: predicated region body
PF: predicated region fallthrough
CT: control target
= control target key end

     0   :  { %v569_v2 = vmov 6.0   ;;  %vm55_vm0 = vcmask 652288   ;;  %vm95_vm2 = vcmask 1041409   ;;  %vm97_vm3 = vcmask 654336   ;;  %s967_s3 = inlined_call_operand.vmem [shape: f32[80,32], index: 3, kind: input, shape index: {}]   ;;  %s968_s1 = inlined_call_operand.vmem [shape: f32[2,6,80], index: 1, kind: input, shape index: {}]   ;;  %s969_s4 = inlined_call_operand.vmem [shape: f32[1,32], index: 4, kind: input, shape index: {}]   ;;  %s970_s6 = inlined_call_operand.vmem [shape: f32[1,32], index: 6, kind: input, shape index: {}]   ;;  %s971_s7 = inlined_call_operand.vmem [shape: f32[400,32], index: 7, kind: input, shape index: {}]   ;;  %s972_s5 = inlined_call_operand.vmem [shape: f32[32,32], index: 5, kind: input, shape index: {}]   ;;  %s973_s2 = inlined_call_operand.vmem [shape: f32[2,1,400], index: 2, kind: input, shape index: {}]   ;;  %s974_s11 = inlined_call_operand.vmem [shape: f32[32,32], index: 11, kind: input, shape index: {}]   ;;  %s975_s8 = inlined_call_operand.vmem [shape: f32[1,32], index: 8, kind: input, shape index: {}]   ;;  %s976_s10 = inlined_call_operand.vmem [shape: f32[1,32], index: 10, kind: input, shape index: {}]   ;;  %s977_s9 = inlined_call_operand.vmem [shape: f32[32,32], index: 9, kind: input, shape index: {}]   ;;  %s978_s15 = inlined_call_operand.vmem [shape: f32[1,32], index: 15, kind: input, shape index: {}]   ;;  %s979_s12 = inlined_call_operand.vmem [shape: f32[32,32], index: 12, kind: input, shape index: {}]   ;;  %s980_s14 = inlined_call_operand.vmem [shape: f32[9,32], index: 14, kind: input, shape index: {}]   ;;  %s981_s0 = inlined_call_operand.vmem [shape: f32[2,8,9], index: 0, kind: input, shape index: {}]   ;;  %s982_s13 = inlined_call_operand.vmem [shape: f32[1,32], index: 13, kind: input, shape index: {}]   ;;  %s983_s16 = inlined_call_operand.vmem [shape: f32[2,9,32], index: 16, kind: output, shape index: {}]  }
   0x1   :  { %985 = sst [smem:[#allocation2_spill]] %s967_s3  ;;  %563 = vrcp.f32 %v569_v2  ;;  %v53_v4 = vld [vmem:[%s968_s1] sm:$0x3f]  ;;  %v54_v5 = vld [vmem:[%s968_s1 + $0x8] sm:$0x3f]  ;;  %v213_v36 = vld [vmem:[%s971_s7 + $0x78] sm:$0xff] }
   0x2   :  { %s986_s23 = sld [smem:[#allocation2_spill]]  ;;  %v56_v7 = vsel %vm55_vm0, %v53_v4, 0.0  ;;  %v63_v8 = vsel %vm55_vm0, %v54_v5, 0.0  ;;  %267 = vmatpush.msra.mxu2 %v213_v36  ;;  %v212_v37 = vld [vmem:[%s971_s7 + $0x70] sm:$0xff]  ;;  %v229_v38 = vld [vmem:[%s971_s7 + $0xf8] sm:$0xff]  ;;  %v211_v40 = vld [vmem:[%s971_s7 + $0x68] sm:$0xff] }
   0x3   :  { %v57_v9 = vrot.slane %v56_v7, 4  ;;  %v64_v10 = vrot.slane %v63_v8, 4  ;;  %287 = vmatpush.msra.mxu3 %v229_v38  ;;  %v167_v39 = vld [vmem:[%s972_s5 + $0x18] sm:$0xff]  ;;  %v228_v41 = vld [vmem:[%s971_s7 + $0xf0] sm:$0xff]  ;;  %v210_v43 = vld [vmem:[%s971_s7 + $0x60] sm:$0xff]  ;;  %vm172_vm8 = vcmask 261120  }
   0x4   :  { %268 = vmatpush.msra.mxu2 %v212_v37  ;;  %188 = vmatpush.msra.mxu1 %v167_v39  ;;  %v166_v42 = vld [vmem:[%s972_s5 + $0x10] sm:$0xff]  ;;  %v227_v44 = vld [vmem:[%s971_s7 + $0xe8] sm:$0xff]  ;;  %v557_v46 = vld [vmem:[%s969_s4] ss:$0 sm:$0xff]  ;;  %vm264_vm9 = vcmask 130048   ;;  %vm492_vm14 = vcmask 1040384  }
   0x5   :  { %v58_v13 = vadd.f32 %v57_v9, %v56_v7  ;;  %v65_v14 = vadd.f32 %v64_v10, %v63_v8  ;;  %288 = vmatpush.msra.mxu3 %v228_v41  ;;  %v165_v45 = vld [vmem:[%s972_s5 + $0x8] sm:$0xff]  ;;  %v209_v47 = vld [vmem:[%s971_s7 + $0x58] sm:$0xff]  ;;  %v226_v48 = vld [vmem:[%s971_s7 + $0xe0] sm:$0xff]  ;;  %vm485_vm15 = vcmask 72704   ;;  %vm537_vm0 = vcmask 253952  }
   0x6   :  { %269 = vmatpush.msra.mxu2 %v211_v40  ;;  %189 = vmatpush.msra.mxu1 %v166_v42  ;;  %v164_v49 = vld [vmem:[%s972_s5] sm:$0xff]  ;;  %v208_v50 = vld [vmem:[%s971_s7 + $0x50] sm:$0xff]  ;;  %v225_v51 = vld [vmem:[%s971_s7 + $0xd8] sm:$0xff] }
   0x7   :  { %v564_v11 = vpop.eup %563  ;;  %v59_v17 = vrot.slane %v58_v13, 2  ;;  %v66_v18 = vrot.slane %v65_v14, 2  ;;  %289 = vmatpush.msra.mxu3 %v227_v44  ;;  %v245_v52 = vld [vmem:[%s971_s7 + $0x178] sm:$0xff]  ;;  %v207_v55 = vld [vmem:[%s971_s7 + $0x48] sm:$0xff]  ;;  %v224_v56 = vld [vmem:[%s971_s7 + $0xd0] sm:$0xff] }
   0x8   :  { %v88_v0 = vld [vmem:[%s986_s23 + $0x48] sm:$0xff]  ;;  %v87_v1 = vld [vmem:[%s986_s23 + $0x40] sm:$0xff]  ;;  %v86_v3 = vld [vmem:[%s986_s23 + $0x38] sm:$0xff]  ;;  %v71_v15 = vmul.f32 6.0, %v564_v11  ;;  %vm75_vm1 = vweird.f32 %v564_v11  ;;  %270 = vmatpush.msra.mxu2 %v210_v43  ;;  %190 = vmatpush.msra.mxu1 %v165_v45 }
   0x9   :  { %106 = vmatpush.msra.mxu0 %v88_v0  ;;  %v85_v6 = vld [vmem:[%s986_s23 + $0x30] sm:$0xff]  ;;  %v84_v12 = vld [vmem:[%s986_s23 + $0x28] sm:$0xff]  ;;  %v83_v16 = vld [vmem:[%s986_s23 + $0x20] sm:$0xff]  ;;  %v60_v21 = vadd.f32 %v59_v17, %v58_v13  ;;  %v67_v22 = vadd.f32 %v66_v18, %v65_v14  ;;  %290 = vmatpush.msra.mxu3 %v226_v48 }
   0xa   :  { %v72_v19 = vsub.f32 1.0, %v71_v15  ;;  %v82_v20 = vld [vmem:[%s986_s23 + $0x18] sm:$0xff]  ;;  %v81_v24 = vld [vmem:[%s986_s23 + $0x10] sm:$0xff]  ;;  %v80_v28 = vld [vmem:[%s986_s23 + $0x8] sm:$0xff]  ;;  %271 = vmatpush.msra.mxu2 %v209_v47  ;;  %191 = vmatpush.msra.mxu1 %v164_v49 }
   0xb   :  { %107 = vmatpush.msra.mxu0 %v87_v1  ;;  %v61_v25 = vrot.slane %v60_v21, 1  ;;  %v68_v26 = vrot.slane %v67_v22, 1  ;;  %v79_v32 = vld [vmem:[%s986_s23] sm:$0xff]  ;;  %291 = vmatpush.msra.mxu3 %v225_v51  ;;  %v244_v57 = vld [vmem:[%s971_s7 + $0x170] sm:$0xff]  ;;  %v223_v60 = vld [vmem:[%s971_s7 + $0xc8] sm:$0xff] }
   0xc   :  { %v73_v23 = vmul.f32 %v564_v11, %v72_v19  ;;  %272 = vmatpush.msra.mxu2 %v208_v50  ;;  %307 = vmatpush.msrb.mxu1 %v245_v52  ;;  %v206_v59 = vld [vmem:[%s971_s7 + $0x40] sm:$0xff]  ;;  %v243_v61 = vld [vmem:[%s971_s7 + $0x168] sm:$0xff]  ;;  %v205_v63 = vld [vmem:[%s971_s7 + $0x38] sm:$0xff] }
   0xd   :  { %108 = vmatpush.msra.mxu0 %v86_v3  ;;  %v62_v29 = vadd.f32 %v61_v25, %v60_v21  ;;  %v69_v30 = vadd.f32 %v68_v26, %v67_v22  ;;  %292 = vmatpush.msra.mxu3 %v224_v56  ;;  %v222_v0 = vld [vmem:[%s971_s7 + $0xc0] sm:$0xff]  ;;  %v204_v3 = vld [vmem:[%s971_s7 + $0x30] sm:$0xff]  ;;  %v221_v4 = vld [vmem:[%s971_s7 + $0xb8] sm:$0xff] }
   0xe   :  { %v74_v27 = vadd.f32 %v564_v11, %v73_v23  ;;  %273 = vmatpush.msra.mxu2 %v207_v55  ;;  %308 = vmatpush.msrb.mxu1 %v244_v57  ;;  %v242_v1 = vld [vmem:[%s971_s7 + $0x160] sm:$0xff]  ;;  %v241_v5 = vld [vmem:[%s971_s7 + $0x158] sm:$0xff]  ;;  %v203_v8 = vld [vmem:[%s971_s7 + $0x28] sm:$0xff] }
   0xf   :  { %109 = vmatpush.msra.mxu0 %v85_v6  ;;  %293 = vmatpush.msra.mxu3 %v223_v60  ;;  %v220_v9 = vld [vmem:[%s971_s7 + $0xb0] sm:$0xff]  ;;  %v202_v13 = vld [vmem:[%s971_s7 + $0x20] sm:$0xff]  ;;  %v219_v14 = vld [vmem:[%s971_s7 + $0xa8] sm:$0xff] }
  0x10   :  { %v76_v31 = vsel %vm75_vm1, %v564_v11, %v74_v27  ;;  %274 = vmatpush.msra.mxu2 %v206_v59  ;;  %309 = vmatpush.msrb.mxu1 %v243_v61  ;;  %v240_v10 = vld [vmem:[%s971_s7 + $0x150] sm:$0xff]  ;;  %v239_v15 = vld [vmem:[%s971_s7 + $0x148] sm:$0xff]  ;;  %v197_v17 = vld [vmem:[%s973_s2 + $0x4] sm:$0xf] }
  0x11   :  { %110 = vmatpush.msra.mxu0 %v84_v12  ;;  %v77_v33 = vmul.f32 %v76_v31, %v62_v29  ;;  %v78_v34 = vmul.f32 %v76_v31, %v69_v30  ;;  %294 = vmatpush.msra.mxu3 %v222_v0  ;;  %v218_v21 = vld [vmem:[%s971_s7 + $0xa0] sm:$0xff]  ;;  %v200_v23 = vld [vmem:[%s971_s7 + $0x10] sm:$0xff]  ;;  %v237_v25 = vld [vmem:[%s971_s7 + $0x138] sm:$0xff]  ;;  %256 = vst [vmem:[#allocation1 + $0x1] ss:$9 sm:$0xff] %v197_v17 }
  0x12   :  { %275 = vmatpush.msra.mxu2 %v205_v63  ;;  %310 = vmatpush.msrb.mxu1 %v242_v1  ;;  %v238_v22 = vld [vmem:[%s971_s7 + $0x140] sm:$0xff]  ;;  %v199_v27 = vld [vmem:[%s971_s7 + $0x8] sm:$0xff]  ;;  %v236_v30 = vld [vmem:[%s971_s7 + $0x130] sm:$0xff] }
  0x13   :  { %111 = vmatpush.msra.mxu0 %v83_v16  ;;  %v96_v35 = vsel %vm95_vm2, %v78_v34, %v77_v33  ;;  %295 = vmatpush.msra.mxu3 %v221_v4  ;;  %v196_v16 = vld [vmem:[%s973_s2] sm:$0xf]  ;;  %v215_v33 = vld [vmem:[%s971_s7 + $0x88] sm:$0xff]  ;;  %v233_v42 = vld [vmem:[%s971_s7 + $0x118] sm:$0xff] }
  0x14   :  { %276 = vmatpush.msra.mxu2 %v204_v3  ;;  %311 = vmatpush.msrb.mxu1 %v241_v5  ;;  %254 = vst [vmem:[#allocation1] ss:$9 sm:$0xff] %v196_v16  ;;  %v235_v34 = vld [vmem:[%s971_s7 + $0x128] sm:$0xff]  ;;  %v214_v36 = vld [vmem:[%s971_s7 + $0x80] sm:$0xff]  ;;  %v232_v45 = vld [vmem:[%s971_s7 + $0x110] sm:$0xff] }
  0x15   :  { %112 = vmatpush.msra.mxu0 %v82_v20  ;;  %296 = vmatpush.msra.mxu3 %v220_v9  ;;  %v201_v20 = vld [vmem:[%s971_s7 + $0x18] sm:$0xff]  ;;  %v234_v38 = vld [vmem:[%s971_s7 + $0x120] sm:$0xff]  ;;  %v231_v47 = vld [vmem:[%s971_s7 + $0x108] sm:$0xff] }
  0x16   :  { %277 = vmatpush.msra.mxu2 %v203_v8  ;;  %312 = vmatpush.msrb.mxu1 %v240_v10  ;;  %v230_v50 = vld [vmem:[%s971_s7 + $0x100] sm:$0xff]  ;;  %v425_v57 = vld [vmem:[%s974_s11 + $0x18] sm:$0xff]  ;;  %v424_v59 = vld [vmem:[%s974_s11 + $0x10] sm:$0xff] }
  0x17   :  { %113 = vmatpush.msra.mxu0 %v81_v24  ;;  %297 = vmatpush.msra.mxu3 %v219_v14  ;;  %v217_v24 = vld [vmem:[%s971_s7 + $0x98] sm:$0xff]  ;;  %v247_v10 = vld [vmem:[%s971_s7 + $0x188] sm:$0xff]  ;;  %v558_v14 = vld [vmem:[%s970_s6] ss:$0 sm:$0xff] }
  0x18   :  { %278 = vmatpush.msra.mxu2 %v202_v13  ;;  %313 = vmatpush.msrb.mxu1 %v239_v15  ;;  %v422_v13 = vld [vmem:[%s974_s11] sm:$0xff] }
  0x19   :  { %114 = vmatpush.msra.mxu0 %v80_v28  ;;  %298 = vmatpush.msra.mxu3 %v218_v21  ;;  %v216_v28 = vld [vmem:[%s971_s7 + $0x90] sm:$0xff]  ;;  %v559_v17 = vld [vmem:[%s975_s8] ss:$0 sm:$0xff] }
  0x1a   :  { %279 = vmatpush.msra.mxu2 %v201_v20  ;;  %314 = vmatpush.msrb.mxu1 %v238_v22 }
  0x1b   :  { %115 = vmatpush.msra.mxu0 %v79_v32  ;;  %299 = vmatpush.msra.mxu3 %v217_v24  ;;  %v198_v32 = vld [vmem:[%s971_s7] sm:$0xff]  ;;  %v258_v41 = vld [vmem:[#allocation1 + $0x9] sm:$0xff] }
  0x1c   :  { %545 = vmatmul.msk.f32.vlgmr.msra.gmra.mxu0 %vm97_vm3, %v96_v35  ;;  %280 = vmatpush.msra.mxu2 %v200_v23  ;;  %v257_v40 = vld [vmem:[#allocation1] sm:$0xff] }
  0x1d   :  { %315 = vmatpush.msrb.mxu1 %v237_v25  ;;  %300 = vmatpush.msra.mxu3 %v216_v28 }
  0x1e   :  { %281 = vmatpush.msra.mxu2 %v199_v27 }
  0x1f   :  { %316 = vmatpush.msrb.mxu1 %v236_v30  ;;  %301 = vmatpush.msra.mxu3 %v215_v33 }
  0x20   :  { %282 = vmatpush.msra.mxu2 %v198_v32 }
  0x21   :  { %317 = vmatpush.msrb.mxu1 %v235_v34  ;;  %283 = vmatmul.f32.vlgmr.msra.gmra.mxu2 %v257_v40 }
  0x22   :  { %302 = vmatpush.msra.mxu3 %v214_v36  ;;  %v394_v36 = vld [vmem:[%s977_s9 + $0x18] sm:$0xff] }
  0x23   :  { %318 = vmatpush.msrb.mxu1 %v234_v38  ;;  %303 = vmatmul.f32.vlgmr.msra.gmra.mxu3 %v258_v41  ;;  %v392_v41 = vld [vmem:[%s977_s9 + $0x8] sm:$0xff] }
  0x24   :  { %468 = vmatpush.msrb.mxu3 %v425_v57  ;;  %414 = vmatpush.msrb.mxu0 %v394_v36 }
  0x25   :  { %319 = vmatpush.msrb.mxu1 %v233_v42 }
  0x26   :  { %469 = vmatpush.msrb.mxu3 %v424_v59 }
  0x27   :  { %320 = vmatpush.msrb.mxu1 %v232_v45 }
  0x29   :  { %321 = vmatpush.msrb.mxu1 %v231_v47 }
  0x2b   :  { %322 = vmatpush.msrb.mxu1 %v230_v50 }
  0x99   :  { %v117_v53 = vpop.f32.mrf.mxu0 }
  0x9a   :  { %v742_v54 = vadd.f32 %v557_v46, %v117_v53 }
  0x9c   :  { %v754_v58 = vmul.f32 0.70710677, %v742_v54 }
  0x9e   :  { %v122_v62 = vmul.f32 %v754_v58, %v754_v58 }
  0xa0   :  { %v776_v2 = vmin.f32 %v122_v62, 16.0 }
  0xa2   :  { %v124_v6 = vmul.f32 2.1237322e-06, %v776_v2  ;;  %v135_v7 = vmul.f32 3.8918573e-05, %v776_v2 }
  0xa4   :  { %v125_v11 = vadd.f32 0.00028619796, %v124_v6  ;;  %v136_v12 = vadd.f32 0.001143296, %v135_v7  ;;  %v120_v7 = vmul.f32 0.5, %v742_v54  ;;  %v423_v54 = vld [vmem:[%s974_s11 + $0x8] sm:$0xff] }
  0xa5   :  { %470 = vmatpush.msrb.mxu3 %v423_v54  ;;  %v482_v54 = vld [vmem:[%s981_s0 + $0x8] sm:$0xff] }
  0xa6   :  { %v126_v18 = vmul.f32 %v125_v11, %v776_v2  ;;  %v137_v19 = vmul.f32 %v136_v12, %v776_v2  ;;  %v259_v11 = vld [vmem:[#allocation1 + $0x12] sm:$0xff]  ;;  %v260_v12 = vld [vmem:[#allocation1 + $0x1b] sm:$0xff]  ;;  %v304_v20 = vpop.f32.mrf.mxu3 }
  0xa7   :  { %471 = vmatpush.msrb.mxu3 %v422_v13  ;;  %v560_v13 = vld [vmem:[%s976_s10] ss:$0 sm:$0xff] }
  0xa8   :  { %v138_v26 = vadd.f32 0.014752088, %v137_v19  ;;  %v127_v29 = vadd.f32 0.0036580483, %v126_v18  ;;  %v284_v18 = vpop.f32.mrf.mxu2 }
  0xa9   :  { %v285_v19 = vadd.f32 %v559_v17, %v284_v18 }
  0xaa   :  { %v139_v31 = vmul.f32 %v138_v26, %v776_v2  ;;  %v128_v37 = vmul.f32 %v127_v29, %v776_v2 }
  0xab   :  { %v305_v22 = vadd.f32 %v304_v20, %v285_v19 }
  0xac   :  { %v140_v35 = vadd.f32 0.112945676, %v139_v31  ;;  %v129_v44 = vadd.f32 0.05243302, %v128_v37 }
  0xae   :  { %v141_v39 = vmul.f32 %v140_v35, %v776_v2  ;;  %v130_v49 = vmul.f32 %v129_v44, %v776_v2 }
  0xb0   :  { %v142_v43 = vadd.f32 0.4994258, %v141_v39  ;;  %v131_v51 = vadd.f32 0.18741608, %v130_v49  ;;  %v393_v39 = vld [vmem:[%s977_s9 + $0x10] sm:$0xff] }
  0xb1   :  { %415 = vmatpush.msrb.mxu0 %v393_v39 }
  0xb2   :  { %v143_v46 = vmul.f32 %v142_v43, %v776_v2  ;;  %v132_v53 = vmul.f32 %v131_v51, %v776_v2  ;;  %v391_v43 = vld [vmem:[%s977_s9] sm:$0xff] }
  0xb3   :  { %416 = vmatpush.msrb.mxu0 %v392_v41 }
  0xb4   :  { %v144_v48 = vadd.f32 1.0, %v143_v46  ;;  %v133_v61 = vadd.f32 1.1283791, %v132_v53 }
  0xb5   :  { %417 = vmatpush.msrb.mxu0 %v391_v43 }
  0xb6   :  { %565 = vrcp.f32 %v144_v48  ;;  %v156_v60 = vand.u32 2147483648, %v144_v48  ;;  %v154_v63 = vand.u32 2147483647, %v144_v48  ;;  %vm150_vm5 = vweird.f32 %v144_v48 }
  0xb7   :  { %v134_v2 = vmul.f32 %v133_v61, %v754_v58  ;;  %v246_v58 = vld [vmem:[%s971_s7 + $0x180] sm:$0xff] }
  0xb8   :  { %v157_v1 = vor.u32 1.1754944e-38, %v156_v60  ;;  %vm155_vm7 = vcmp.eq.f32.partialorder %v154_v63, 8.507059e+37 }
  0xbc   :  { %v566_v52 = vpop.eup %565 }
  0xbd   :  { %v146_v55 = vmul.f32 %v566_v52, %v144_v48  ;;  %vm151_vm4 = vweird.f32 %v566_v52 }
  0xbe   :  { %vm152_vm6 = vmor %vm150_vm5, %vm151_vm4 }
  0xbf   :  { %v147_v56 = vsub.f32 1.0, %v146_v55 }
  0xc1   :  { %v148_v62 = vmul.f32 %v566_v52, %v147_v56 }
  0xc3   :  { %v149_v0 = vadd.f32 %v566_v52, %v148_v62 }
  0xc5   :  { %v153_v3 = vsel %vm152_vm6, %v566_v52, %v149_v0 }
  0xc6   :  { %v158_v4 = vsel %vm155_vm7, %v157_v1, %v153_v3 }
  0xc7   :  { %v159_v5 = vmul.f32 %v158_v4, %v134_v2 }
  0xc9   :  { %v546_v6 = vclamps-f32 %v159_v5, 1.0 }
  0xcb   :  { %v162_v8 = vadd.f32 1.0, %v546_v6 }
  0xcd   :  { %v163_v9 = vmul.f32 %v162_v8, %v120_v7  ;;  %v429_v7 = vld [vmem:[%s979_s12 + $0x18] sm:$0xff]  ;;  %v484_v8 = vld [vmem:[%s980_s14 + $0x8] sm:$0x1] }
  0xce   :  { %445 = vmatpush.msrb.mxu2 %v429_v7  ;;  %553 = vmatpush.msk.msra.mxu0 %vm492_vm14, %v484_v8 }
  0xcf   :  { %547 = vmatmul.msk.f32.vlgmr.msra.gmra.mxu1 %vm172_vm8, %v163_v9  ;;  %v428_v9 = vld [vmem:[%s979_s12 + $0x10] sm:$0xff] }
  0xd0   :  { %341 = vmatpush.msra.mxu1 %v247_v10  ;;  %v483_v10 = vld [vmem:[%s980_s14] sm:$0xff]  ;;  %446 = vmatpush.msrb.mxu2 %v428_v9 }
  0xd1   :  { %511 = vmatpush.msra.mxu0 %v483_v10 }
  0xd2   :  { %342 = vmatpush.msra.mxu1 %v246_v58  ;;  %v427_v58 = vld [vmem:[%s979_s12 + $0x8] sm:$0xff] }
  0xd3   :  { %447 = vmatpush.msrb.mxu2 %v427_v58 }
  0xd7   :  { %323 = vmatmul.f32.vlgmr.msrb.gmra.mxu1 %v259_v11  ;;  %v426_v11 = vld [vmem:[%s979_s12] sm:$0xff] }
  0xd8   :  { %448 = vmatpush.msrb.mxu2 %v426_v11 }
  0xdf   :  { %548 = vmatmul.msk.f32.vlgmr.msra.gmra.mxu1 %vm264_vm9, %v260_v12  ;;  %v481_v12 = vld [vmem:[%s981_s0] sm:$0xff] }
 0x14c   :  { %v193_v15 = vpop.f32.mrf.mxu1 }
 0x14d   :  { %v194_v16 = vadd.f32 %v558_v14, %v193_v15 }
 0x14f   :  { %552 = vmatmul.msk.f32.vlgmr.msrb.gmra.mxu3 %vm172_vm8, %v194_v16  ;;  %v561_v16 = vld [vmem:[%s978_s15] ss:$0 sm:$0xff] }
 0x154   :  { %v324_v21 = vpop.f32.mrf.mxu1 }
 0x155   :  { %v325_v23 = vadd.f32 %v324_v21, %v305_v22 }
 0x15c   :  { %v344_v24 = vpop.f32.mrf.mxu1 }
 0x15d   :  { %v345_v25 = vadd.f32 %v344_v24, %v325_v23  ;;  %v562_v23 = vld [vmem:[%s982_s13] ss:$0 sm:$0xff] }
 0x15f   :  { %v348_v26 = vmul.f32 0.70710677, %v345_v25  ;;  %v347_v4 = vmul.f32 0.5, %v345_v25 }
 0x161   :  { %v349_v27 = vmul.f32 %v348_v26, %v348_v26 }
 0x163   :  { %v350_v28 = vmin.f32 %v349_v27, 16.0 }
 0x165   :  { %v351_v29 = vmul.f32 2.1237322e-06, %v350_v28  ;;  %v362_v30 = vmul.f32 3.8918573e-05, %v350_v28 }
 0x167   :  { %v352_v31 = vadd.f32 0.00028619796, %v351_v29  ;;  %v363_v32 = vadd.f32 0.001143296, %v362_v30 }
 0x169   :  { %v353_v33 = vmul.f32 %v352_v31, %v350_v28  ;;  %v364_v34 = vmul.f32 %v363_v32, %v350_v28 }
 0x16b   :  { %v365_v35 = vadd.f32 0.014752088, %v364_v34  ;;  %v354_v37 = vadd.f32 0.0036580483, %v353_v33 }
 0x16d   :  { %v366_v38 = vmul.f32 %v365_v35, %v350_v28  ;;  %v355_v42 = vmul.f32 %v354_v37, %v350_v28 }
 0x16f   :  { %v367_v40 = vadd.f32 0.112945676, %v366_v38  ;;  %v356_v46 = vadd.f32 0.05243302, %v355_v42 }
 0x171   :  { %v368_v44 = vmul.f32 %v367_v40, %v350_v28  ;;  %v357_v49 = vmul.f32 %v356_v46, %v350_v28 }
 0x173   :  { %v369_v45 = vadd.f32 0.4994258, %v368_v44  ;;  %v358_v50 = vadd.f32 0.18741608, %v357_v49 }
 0x175   :  { %v370_v47 = vmul.f32 %v369_v45, %v350_v28  ;;  %v359_v52 = vmul.f32 %v358_v50, %v350_v28 }
 0x177   :  { %v371_v48 = vadd.f32 1.0, %v370_v47  ;;  %v360_v57 = vadd.f32 1.1283791, %v359_v52 }
 0x179   :  { %567 = vrcp.f32 %v371_v48  ;;  %v383_v56 = vand.u32 2147483648, %v371_v48  ;;  %v381_v60 = vand.u32 2147483647, %v371_v48  ;;  %vm377_vm11 = vweird.f32 %v371_v48 }
 0x17a   :  { %v361_v63 = vmul.f32 %v360_v57, %v348_v26 }
 0x17b   :  { %v384_v62 = vor.u32 1.1754944e-38, %v383_v56  ;;  %vm382_vm13 = vcmp.eq.f32.partialorder %v381_v60, 8.507059e+37 }
 0x17f   :  { %v568_v51 = vpop.eup %567 }
 0x180   :  { %v373_v53 = vmul.f32 %v568_v51, %v371_v48  ;;  %vm378_vm10 = vweird.f32 %v568_v51 }
 0x181   :  { %vm379_vm12 = vmor %vm377_vm11, %vm378_vm10 }
 0x182   :  { %v374_v55 = vsub.f32 1.0, %v373_v53 }
 0x184   :  { %v375_v59 = vmul.f32 %v568_v51, %v374_v55 }
 0x186   :  { %v376_v61 = vadd.f32 %v568_v51, %v375_v59 }
 0x188   :  { %v380_v0 = vsel %vm379_vm12, %v568_v51, %v376_v61 }
 0x189   :  { %v385_v1 = vsel %vm382_vm13, %v384_v62, %v380_v0 }
 0x18a   :  { %v386_v2 = vmul.f32 %v385_v1, %v361_v63 }
 0x18c   :  { %v549_v3 = vclamps-f32 %v386_v2, 1.0 }
 0x18e   :  { %v389_v5 = vadd.f32 1.0, %v549_v3 }
 0x190   :  { %v390_v6 = vmul.f32 %v389_v5, %v347_v4 }
 0x192   :  { %550 = vmatmul.msk.f32.vlgmr.msrb.gmra.mxu0 %vm172_vm8, %v390_v6 }
 0x19a   :  { %554 = vmatmul.msk.f32.vlgmr.msra.gmra.mxu0 %vm485_vm15, %v481_v12 }
 0x1a2   :  { %555 = vmatmul.msk.f32.gmra.mxu0 %vm485_vm15, %v482_v54 }
 0x1d2   :  { %v473_v24 = vpop.f32.mrf.mxu3 }
 0x20f   :  { %v419_v14 = vpop.f32.mrf.mxu0 }
 0x210   :  { %v420_v15 = vadd.f32 %v560_v13, %v419_v14 }
 0x212   :  { %551 = vmatmul.msk.f32.vlgmr.msrb.gmra.mxu2 %vm172_vm8, %v420_v15 }
 0x217   :  { %v513_v17 = vpop.f32.mrf.mxu0 }
 0x218   :  { %v523_v18 = vadd.f32 %v561_v16, %v513_v17 }
 0x21a   :  { %v530_v19 = vrot.slane %v523_v18, 7 }
 0x21c   :  { %538 = vst.msk [vmem:[%s983_s16 + $0x8] sm:$0x1] %vm537_vm0, %v530_v19 }
 0x21f   :  { %v516_v20 = vpop.f32.mrf.mxu0 }
 0x220   :  { %v524_v21 = vadd.f32 %v561_v16, %v516_v20 }
 0x222   :  { %v531_v22 = vrot.slane %v524_v21, 7 }
 0x224   :  { %540 = vst.msk [vmem:[%s983_s16 + $0x18] sm:$0x1] %vm537_vm0, %v531_v22 }
 0x295   :  { %v450_v25 = vpop.f32.mrf.mxu2 }
 0x296   :  { %v474_v26 = vadd.f32 %v473_v24, %v450_v25 }
 0x298   :  { %v480_v27 = vadd.f32 %v562_v23, %v474_v26 }
 0x29a   :  { %v526_v28 = vrot.slane %v480_v27, 1  ;;  %v534_v29 = vsel %vm492_vm14, %v480_v27, %v530_v19 }
 0x29b   :  { %536 = vst.msk [vmem:[%s983_s16] sm:$0xff] %vm172_vm8, %v534_v29 }
 0x29c   :  { %v535_v30 = vsel %vm492_vm14, %v526_v28, %v531_v22 }
 0x29d   :  { %539 = vst.msk [vmem:[%s983_s16 + $0x10] sm:$0xff] %vm172_vm8, %v535_v30 }

</bundles_post_ra>
